<compile_context>
chip_gen: v7x
topology: tpu7x:2x2x1
jax: 0.10.0
libtpu: 0.0.40
codegen_flags: <defaults>
</compile_context>

<pallas_src>
import functools

import jax
import jax.numpy as jnp
from jax import lax
from jax.experimental import pallas as pl
from jax.experimental.pallas import tpu as pltpu

EPS = 1e-5
MATMUL_DTYPE = jnp.bfloat16  # MXU operand dtype (accumulation stays f32)


def preact_block_kernel(x_ref, s1_ref, b1_ref, w1s_ref, s2_ref, b2_ref,
                        w2s_ref, out_ref, *, img_h):
    """One block of B images per grid step, flat (B*H, W*C) lane-dense layout.

    x_ref   : (B*H, W*Cin)            bf16  input rows, NHWC flattened (W, C)
    s1, b1  : (1, W*Cin)              f32   folded BN1 scale/bias, tiled over W
    w1s_ref : (3*W*Cin, W*Cout)       bf16  conv1 weights, kh taps stacked on K
    s2, b2  : (1, W*Cout)             f32   folded BN2 scale/bias, tiled over W
    w2s_ref : (3*W*Cout+W*Cin, W*Cout) bf16 conv2 (kh-stacked) + 1x1 shortcut
    out_ref : (B*H, W*Cout)           f32
    """
    f32 = jnp.float32
    mm = w1s_ref.dtype                       # MXU operand dtype (bf16)
    BH = x_ref.shape[0]
    H = img_h

    # ---- a = relu(bn1(x)) : f32 elementwise (v5e has no bf16 VPU path) -----
    a = jnp.maximum(x_ref[...].astype(f32) * s1_ref[...] + b1_ref[...], 0.0)

    # ---- per-image row index for halo masking -------------------------------
    # Rolls along the stacked (B*H) row axis wrap across image boundaries; the
    # wrapped row is exactly the halo row that must be zero, so mask it.
    row = lax.broadcasted_iota(jnp.int32, (BH, 1), 0) % H

    def halo_taps(v):
        # up[r] = v[r-1] (0 at the top row of each image)
        up = jnp.where(row == 0, 0.0, pltpu.roll(v, shift=1, axis=0))
        # dn[r] = v[r+1] (0 at the bottom row of each image)
        dn = jnp.where(row == H - 1, 0.0, pltpu.roll(v, shift=BH - 1, axis=0))
        return up, dn

    # ---- conv1 (3x3, pad=1): kh taps concatenated along K -> one MXU dot ----
    a_up, a_dn = halo_taps(a)
    x1 = jnp.concatenate([a_up, a, a_dn], axis=-1).astype(mm)   # (BH, 3*W*Cin)
    h1 = jnp.dot(x1, w1s_ref[...], preferred_element_type=f32)  # (BH, W*Cout)

    # ---- relu(bn2(.)) in f32 -------------------------------------------------
    mid = jnp.maximum(h1 * s2_ref[...] + b2_ref[...], 0.0)

    # ---- conv2 (3x3, pad=1) + 1x1 shortcut fused into one dot ----------------
    m_up, m_dn = halo_taps(mid)
    x2 = jnp.concatenate([m_up, mid, m_dn, a], axis=-1).astype(mm)
    out = jnp.dot(x2, w2s_ref[...], preferred_element_type=f32)

    # ---- full (B*H, W*Cout) lane-dense unmasked store ------------------------
    out_ref[...] = out.astype(out_ref.dtype)


def _band_conv3x3(w_hwio, width):
    """(3, 3, Ci, Co) HWIO weights -> (3, W*Ci, W*Co) kw-banded matrices.

    B[kh][wi*Ci + ci, wo*Co + co] = w[kh, wi - wo + 1, ci, co] (0 elsewhere),
    so a row of activations flattened over (w, c) times B[kh] yields that kh
    tap's contribution to the conv output row; the width zero-padding is folded
    into the zero band structure.
    """
    kh, kw, ci, co = w_hwio.shape
    wo = jnp.arange(width)[:, None, None]
    wi = jnp.arange(width)[None, :, None]
    k = jnp.arange(kw)[None, None, :]
    taps = (wi == wo + k - 1).astype(w_hwio.dtype)        # (Wo, Wi, kw)
    band = jnp.einsum('OIk,hkic->hIiOc', taps, w_hwio)    # (kh, Wi, Ci, Wo, Co)
    return band.reshape(kh, width * ci, width * co)


def _band_conv1x1(w_io, width):
    """(Ci, Co) 1x1 conv weights -> (W*Ci, W*Co) block-diagonal matrix."""
    ci, co = w_io.shape
    eye = jnp.eye(width, dtype=w_io.dtype)
    band = jnp.einsum('OI,ic->IiOc', eye, w_io)           # (W, Ci, W, Co)
    return band.reshape(width * ci, width * co)


def prepare_preact_block(params, width, matmul_dtype=MATMUL_DTYPE):
    """Fold BN + build banded / kh-stacked MXU weights ONCE (model init)."""
    (g1, be1, m1, v1, w1_oihw, g2, be2, m2, v2, w2_oihw, ws_oihw) = params
    cout, cin = int(w1_oihw.shape[0]), int(w1_oihw.shape[1])

    s1 = g1 / jnp.sqrt(v1 + EPS)
    b1 = be1 - m1 * s1
    s2 = g2 / jnp.sqrt(v2 + EPS)
    b2 = be2 - m2 * s2
    s1_t = jnp.tile(s1, width).reshape(1, width * cin).astype(jnp.float32)
    b1_t = jnp.tile(b1, width).reshape(1, width * cin).astype(jnp.float32)
    s2_t = jnp.tile(s2, width).reshape(1, width * cout).astype(jnp.float32)
    b2_t = jnp.tile(b2, width).reshape(1, width * cout).astype(jnp.float32)

    w1_hwio = jnp.transpose(w1_oihw, (2, 3, 1, 0)).astype(jnp.float32)
    w2_hwio = jnp.transpose(w2_oihw, (2, 3, 1, 0)).astype(jnp.float32)
    ws_io = jnp.transpose(ws_oihw[:, :, 0, 0], (1, 0)).astype(jnp.float32)

    w1b = _band_conv3x3(w1_hwio, width)       # (3, W*Cin,  W*Cout)
    w2b = _band_conv3x3(w2_hwio, width)       # (3, W*Cout, W*Cout)
    wsb = _band_conv1x1(ws_io, width)         # (W*Cin, W*Cout)

    # kh taps stacked along K (single dot per conv); 1x1 shortcut fused into
    # the conv2 stack so conv2 + shortcut is one dot with K = 3*W*Cout + W*Cin.
    w1_stack = w1b.reshape(3 * width * cin, width * cout).astype(matmul_dtype)
    w2_stack = jnp.concatenate(
        [w2b.reshape(3 * width * cout, width * cout), wsb],
        axis=0).astype(matmul_dtype)

    return {"s1": s1_t, "b1": b1_t, "s2": s2_t, "b2": b2_t,
            "w1_stack": w1_stack, "w2_stack": w2_stack,
            "cin": cin, "cout": cout, "width": int(width)}


def preact_block_pallas(x_nchw, prepared, block_batch=None):
    """Wrapper: NCHW in / NCHW out; `prepared` from prepare_preact_block()."""
    N, Cin, H, W = x_nchw.shape
    Cout = prepared["cout"]
    assert prepared["cin"] == Cin and prepared["width"] == W
    WCin, WCout = W * Cin, W * Cout

    # Images per grid step: make M = B*H >= 128 when the batch allows it
    # (per-grid-step overhead and MXU M-fill dominate at small M).
    if block_batch is None:
        block_batch = max(1, min(N, -(-128 // H)))
    B = block_batch
    n_pad = (-N) % B
    grid_n = (N + n_pad) // B
    # TODO(synk): on v7x, when N is large, cap B so grid_n stays >= 4 (and
    # even) so both TensorCores get >= 2 pipelined steps each.

    # Layout glue: NCHW -> flat (N*H, W*Cin).  In a full network keep this
    # layout (and bf16) across blocks instead of transposing per block.
    x = jnp.transpose(x_nchw, (0, 2, 3, 1)).reshape(N * H, WCin)
    if n_pad:
        x = jnp.concatenate(
            [x, jnp.zeros((n_pad * H, WCin), x.dtype)], axis=0)
    # Stream activations HBM->VMEM as bf16 (halves streamed bytes); the BN /
    # ReLU elementwise math is done in f32 inside the kernel.
    x = x.astype(MATMUL_DTYPE)

    kernel = functools.partial(preact_block_kernel, img_h=H)

    out2d = pl.pallas_call(
        kernel,
        out_shape=jax.ShapeDtypeStruct(((N + n_pad) * H, WCout), jnp.float32),
        grid_spec=pltpu.PrefetchScalarGridSpec(
            num_scalar_prefetch=0,
            grid=(grid_n,),
            in_specs=[
                pl.BlockSpec((B * H, WCin), lambda n: (n, 0)),
                pl.BlockSpec((1, WCin), lambda n: (0, 0)),
                pl.BlockSpec((1, WCin), lambda n: (0, 0)),
                pl.BlockSpec((3 * WCin, WCout), lambda n: (0, 0)),
                pl.BlockSpec((1, WCout), lambda n: (0, 0)),
                pl.BlockSpec((1, WCout), lambda n: (0, 0)),
                pl.BlockSpec((3 * WCout + WCin, WCout), lambda n: (0, 0)),
            ],
            out_specs=pl.BlockSpec((B * H, WCout), lambda n: (n, 0)),
        ),
        compiler_params=pltpu.CompilerParams(
            dimension_semantics=("parallel",)),
    )(x, prepared["s1"], prepared["b1"], prepared["w1_stack"],
      prepared["s2"], prepared["b2"], prepared["w2_stack"])

    out = out2d[:N * H].reshape(N, H, W, Cout)
    return jnp.transpose(out, (0, 3, 1, 2))  # back to NCHW


def preact_block_reference(x, params):
    """Pure-JAX NCHW reference mirroring the PyTorch forward (inference BN)."""
    (g1, be1, m1, v1, w1, g2, be2, m2, v2, w2, ws) = params

    def bn(x, g, b, m, v):
        sh = (1, -1, 1, 1)
        return (x - m.reshape(sh)) / jnp.sqrt(v.reshape(sh) + EPS) * \
            g.reshape(sh) + b.reshape(sh)

    dn = ('NCHW', 'OIHW', 'NCHW')
    a = jax.nn.relu(bn(x, g1, be1, m1, v1))
    sc = lax.conv_general_dilated(a, ws, (1, 1), 'VALID', dimension_numbers=dn)
    o = lax.conv_general_dilated(a, w1, (1, 1), [(1, 1), (1, 1)],
                                 dimension_numbers=dn)
    o = jax.nn.relu(bn(o, g2, be2, m2, v2))
    o = lax.conv_general_dilated(o, w2, (1, 1), [(1, 1), (1, 1)],
                                 dimension_numbers=dn)
    return o + sc


def make_params(key, in_planes, planes):
    ks = jax.random.split(key, 8)
    g1 = 1.0 + 0.1 * jax.random.normal(ks[0], (in_planes,), jnp.float32)
    be1 = 0.1 * jax.random.normal(ks[1], (in_planes,), jnp.float32)
    m1 = 0.1 * jax.random.normal(ks[2], (in_planes,), jnp.float32)
    v1 = jnp.abs(1.0 + 0.1 * jax.random.normal(ks[3], (in_planes,), jnp.float32))
    g2 = 1.0 + 0.1 * jax.random.normal(ks[4], (planes,), jnp.float32)
    be2 = 0.1 * jax.random.normal(ks[5], (planes,), jnp.float32)
    m2 = 0.1 * jax.random.normal(ks[6], (planes,), jnp.float32)
    v2 = jnp.abs(1.0 + 0.1 * jax.random.normal(ks[7], (planes,), jnp.float32))

    kw = jax.random.split(jax.random.fold_in(key, 123), 3)
    w1 = 0.1 * jax.random.normal(kw[0], (planes, in_planes, 3, 3), jnp.float32)
    w2 = 0.1 * jax.random.normal(kw[1], (planes, planes, 3, 3), jnp.float32)
    ws = 0.1 * jax.random.normal(kw[2], (planes, in_planes, 1, 1), jnp.float32)
    return (g1, be1, m1, v1, w1, g2, be2, m2, v2, w2, ws)


if __name__ == "__main__":
    key = jax.random.PRNGKey(0)
    N, in_planes, planes, H, W = 2, 4, 8, 16, 16  # stride=1, in != planes

    kx, kp = jax.random.split(key)
    x = jax.random.normal(kx, (N, in_planes, H, W), jnp.float32)
    # Activations are streamed to the kernel in bf16; use bf16-representable
    # inputs so kernel vs. reference isolates the bf16 MXU-operand error.
    x = x.astype(jnp.bfloat16).astype(jnp.float32)
    params = make_params(kp, in_planes, planes)

    prepared = prepare_preact_block(params, W)   # once, at "model init"

    out = jax.block_until_ready(preact_block_pallas(x, prepared))
    ref = jax.block_until_ready(preact_block_reference(x, params))

    assert out.shape == (N, planes, H, W)
    # bf16 MXU operands with f32 accumulation -> relaxed tolerance vs f32 ref.
    assert jnp.allclose(out, ref, rtol=3e-2, atol=3e-2), (
        f"max abs err = {jnp.max(jnp.abs(out - ref))}")

    print("KERNEL_OK")
</pallas_src>

<mosaic_0001>
module attributes {stable_mosaic.version = 11 : i64} {
  func.func @preact_block_kernel(%arg0: i32, %arg1: memref<32x64xbf16, #tpu.memory_space<vmem>>, %arg2: memref<1x64xf32, #tpu.memory_space<vmem>>, %arg3: memref<1x64xf32, #tpu.memory_space<vmem>>, %arg4: memref<192x128xbf16, #tpu.memory_space<vmem>>, %arg5: memref<1x128xf32, #tpu.memory_space<vmem>>, %arg6: memref<1x128xf32, #tpu.memory_space<vmem>>, %arg7: memref<448x128xbf16, #tpu.memory_space<vmem>>, %arg8: memref<32x128xf32, #tpu.memory_space<vmem>>) attributes {dimension_semantics = [#tpu.dimension_semantics<parallel>], iteration_bounds = array<i64: 1>, scalar_prefetch = 0 : i64, scratch_operands = 0 : i64, tpu.core_type = #tpu.core_type<tc>, window_params = [{transform_indices = @transform_0, window_bounds = array<i64: 32, 64>}, {pipeline_mode = #tpu.pipeline_mode<synchronous>, transform_indices = @transform_1, window_bounds = array<i64: 1, 64>}, {pipeline_mode = #tpu.pipeline_mode<synchronous>, transform_indices = @transform_2, window_bounds = array<i64: 1, 64>}, {pipeline_mode = #tpu.pipeline_mode<synchronous>, transform_indices = @transform_3, window_bounds = array<i64: 192, 128>}, {pipeline_mode = #tpu.pipeline_mode<synchronous>, transform_indices = @transform_4, window_bounds = array<i64: 1, 128>}, {pipeline_mode = #tpu.pipeline_mode<synchronous>, transform_indices = @transform_5, window_bounds = array<i64: 1, 128>}, {pipeline_mode = #tpu.pipeline_mode<synchronous>, transform_indices = @transform_6, window_bounds = array<i64: 448, 128>}, {transform_indices = @transform_7, window_bounds = array<i64: 32, 128>}]} {
    %c0 = arith.constant 0 : index
    %c0_0 = arith.constant 0 : index
    %0 = vector.load %arg1[%c0, %c0_0] : memref<32x64xbf16, #tpu.memory_space<vmem>>, vector<32x64xbf16>
    %1 = arith.extf %0 : vector<32x64xbf16> to vector<32x64xf32>
    %c0_1 = arith.constant 0 : index
    %c0_2 = arith.constant 0 : index
    %2 = vector.load %arg2[%c0_1, %c0_2] : memref<1x64xf32, #tpu.memory_space<vmem>>, vector<1x64xf32>
    %3 = vector.broadcast %2 : vector<1x64xf32> to vector<32x64xf32>
    %4 = arith.mulf %1, %3 : vector<32x64xf32>
    %c0_3 = arith.constant 0 : index
    %c0_4 = arith.constant 0 : index
    %5 = vector.load %arg3[%c0_3, %c0_4] : memref<1x64xf32, #tpu.memory_space<vmem>>, vector<1x64xf32>
    %6 = vector.broadcast %5 : vector<1x64xf32> to vector<32x64xf32>
    %7 = arith.addf %4, %6 : vector<32x64xf32>
    %cst = arith.constant 0.000000e+00 : f32
    %8 = vector.broadcast %cst : f32 to vector<32x64xf32>
    %9 = arith.maximumf %7, %8 : vector<32x64xf32>
    %10 = tpu.iota {dimensions = array<i32: 0>} : vector<32x1xi32>
    %c16_i32 = arith.constant 16 : i32
    %c0_i32 = arith.constant 0 : i32
    %11 = arith.cmpi eq, %c16_i32, %c0_i32 : i32
    %c1_i32 = arith.constant 1 : i32
    %12 = arith.select %11, %c1_i32, %c16_i32 : i32
    %13 = vector.broadcast %12 : i32 to vector<32x1xi32>
    %14 = arith.remsi %10, %13 : vector<32x1xi32>
    %c0_i32_5 = arith.constant 0 : i32
    %15 = vector.broadcast %c0_i32_5 : i32 to vector<32x1xi32>
    %16 = arith.cmpi ne, %14, %15 : vector<32x1xi32>
    %c0_i32_6 = arith.constant 0 : i32
    %17 = vector.broadcast %c0_i32_6 : i32 to vector<32x1xi32>
    %18 = arith.cmpi slt, %14, %17 : vector<32x1xi32>
    %c0_i32_7 = arith.constant 0 : i32
    %19 = arith.cmpi slt, %12, %c0_i32_7 : i32
    %20 = vector.broadcast %19 : i1 to vector<32x1xi1>
    %21 = vector.broadcast %20 : vector<32x1xi1> to vector<32x1xi1>
    %22 = arith.xori %18, %21 : vector<32x1xi1>
    %23 = arith.andi %22, %16 : vector<32x1xi1>
    %24 = vector.broadcast %12 : i32 to vector<32x1xi32>
    %25 = arith.addi %14, %24 : vector<32x1xi32>
    %26 = arith.select %23, %25, %14 : vector<32x1xi1>, vector<32x1xi32>
    %c0_i32_8 = arith.constant 0 : i32
    %27 = vector.broadcast %c0_i32_8 : i32 to vector<32x1xi32>
    %28 = arith.cmpi eq, %26, %27 : vector<32x1xi32>
    %c1_i32_9 = arith.constant 1 : i32
    %29 = tpu.dynamic_rotate %9 by %c1_i32_9 dim 0 : vector<32x64xf32>, i32 -> vector<32x64xf32>
    %cst_10 = arith.constant 0.000000e+00 : f32
    %30 = vector.shape_cast %28 : vector<32x1xi1> to vector<32x1xi1>
    %31 = vector.broadcast %30 : vector<32x1xi1> to vector<32x64xi1>
    %32 = vector.broadcast %cst_10 : f32 to vector<32x64xf32>
    %33 = arith.select %31, %32, %29 : vector<32x64xi1>, vector<32x64xf32>
    %c15_i32 = arith.constant 15 : i32
    %34 = vector.broadcast %c15_i32 : i32 to vector<32x1xi32>
    %35 = arith.cmpi eq, %26, %34 : vector<32x1xi32>
    %c31_i32 = arith.constant 31 : i32
    %36 = tpu.dynamic_rotate %9 by %c31_i32 dim 0 : vector<32x64xf32>, i32 -> vector<32x64xf32>
    %cst_11 = arith.constant 0.000000e+00 : f32
    %37 = vector.shape_cast %35 : vector<32x1xi1> to vector<32x1xi1>
    %38 = vector.broadcast %37 : vector<32x1xi1> to vector<32x64xi1>
    %39 = vector.broadcast %cst_11 : f32 to vector<32x64xf32>
    %40 = arith.select %38, %39, %36 : vector<32x64xi1>, vector<32x64xf32>
    %41 = tpu.concatenate %33, %9, %40 in 1 : vector<32x64xf32>, vector<32x64xf32>, vector<32x64xf32> -> vector<32x192xf32>
    %42 = arith.truncf %41 : vector<32x192xf32> to vector<32x192xbf16>
    %c0_12 = arith.constant 0 : index
    %c0_13 = arith.constant 0 : index
    %43 = vector.load %arg4[%c0_12, %c0_13] : memref<192x128xbf16, #tpu.memory_space<vmem>>, vector<192x128xbf16>
    %cst_14 = arith.constant dense<0.000000e+00> : vector<32x128xf32>
    %44 = tpu.matmul %42, %43, %cst_14 {dimension_numbers = #tpu.dot_dimension_numbers<[1], [0], [0], [1], [0, 0, 1, 1], [], []>} : vector<32x192xbf16>, vector<192x128xbf16>, vector<32x128xf32> -> vector<32x128xf32>
    %c0_15 = arith.constant 0 : index
    %c0_16 = arith.constant 0 : index
    %45 = vector.load %arg5[%c0_15, %c0_16] : memref<1x128xf32, #tpu.memory_space<vmem>>, vector<1x128xf32>
    %46 = vector.broadcast %45 : vector<1x128xf32> to vector<32x128xf32>
    %47 = arith.mulf %44, %46 : vector<32x128xf32>
    %c0_17 = arith.constant 0 : index
    %c0_18 = arith.constant 0 : index
    %48 = vector.load %arg6[%c0_17, %c0_18] : memref<1x128xf32, #tpu.memory_space<vmem>>, vector<1x128xf32>
    %49 = vector.broadcast %48 : vector<1x128xf32> to vector<32x128xf32>
    %50 = arith.addf %47, %49 : vector<32x128xf32>
    %cst_19 = arith.constant 0.000000e+00 : f32
    %51 = vector.broadcast %cst_19 : f32 to vector<32x128xf32>
    %52 = arith.maximumf %50, %51 : vector<32x128xf32>
    %c0_i32_20 = arith.constant 0 : i32
    %53 = vector.broadcast %c0_i32_20 : i32 to vector<32x1xi32>
    %54 = arith.cmpi eq, %26, %53 : vector<32x1xi32>
    %c1_i32_21 = arith.constant 1 : i32
    %55 = tpu.dynamic_rotate %52 by %c1_i32_21 dim 0 : vector<32x128xf32>, i32 -> vector<32x128xf32>
    %cst_22 = arith.constant 0.000000e+00 : f32
    %56 = vector.shape_cast %54 : vector<32x1xi1> to vector<32x1xi1>
    %57 = vector.broadcast %56 : vector<32x1xi1> to vector<32x128xi1>
    %58 = vector.broadcast %cst_22 : f32 to vector<32x128xf32>
    %59 = arith.select %57, %58, %55 : vector<32x128xi1>, vector<32x128xf32>
    %c15_i32_23 = arith.constant 15 : i32
    %60 = vector.broadcast %c15_i32_23 : i32 to vector<32x1xi32>
    %61 = arith.cmpi eq, %26, %60 : vector<32x1xi32>
    %c31_i32_24 = arith.constant 31 : i32
    %62 = tpu.dynamic_rotate %52 by %c31_i32_24 dim 0 : vector<32x128xf32>, i32 -> vector<32x128xf32>
    %cst_25 = arith.constant 0.000000e+00 : f32
    %63 = vector.shape_cast %61 : vector<32x1xi1> to vector<32x1xi1>
    %64 = vector.broadcast %63 : vector<32x1xi1> to vector<32x128xi1>
    %65 = vector.broadcast %cst_25 : f32 to vector<32x128xf32>
    %66 = arith.select %64, %65, %62 : vector<32x128xi1>, vector<32x128xf32>
    %67 = tpu.concatenate %59, %52, %66, %9 in 1 : vector<32x128xf32>, vector<32x128xf32>, vector<32x128xf32>, vector<32x64xf32> -> vector<32x448xf32>
    %68 = arith.truncf %67 : vector<32x448xf32> to vector<32x448xbf16>
    %c0_26 = arith.constant 0 : index
    %c0_27 = arith.constant 0 : index
    %69 = vector.load %arg7[%c0_26, %c0_27] : memref<448x128xbf16, #tpu.memory_space<vmem>>, vector<448x128xbf16>
    %cst_28 = arith.constant dense<0.000000e+00> : vector<32x128xf32>
    %70 = tpu.matmul %68, %69, %cst_28 {dimension_numbers = #tpu.dot_dimension_numbers<[1], [0], [0], [1], [0, 0, 1, 1], [], []>} : vector<32x448xbf16>, vector<448x128xbf16>, vector<32x128xf32> -> vector<32x128xf32>
    %c0_29 = arith.constant 0 : index
    %c0_30 = arith.constant 0 : index
    %71 = vector.load %arg8[%c0_29, %c0_30] : memref<32x128xf32, #tpu.memory_space<vmem>>, vector<32x128xf32>
    tpu.vector_store %arg8[%c0_29, %c0_30], %70 {strides = array<i32>} : memref<32x128xf32, #tpu.memory_space<vmem>>, vector<32x128xf32>,
    return
  }
  func.func @transform_0(%arg0: i32) -> (i32, i32) {
    %c0_i32 = arith.constant 0 : i32
    %c0_i32_0 = arith.constant 0 : i32
    return %arg0, %c0_i32 : i32, i32
  }
  func.func @transform_1(%arg0: i32) -> (i32, i32) {
    %c0_i32 = arith.constant 0 : i32
    %c0_i32_0 = arith.constant 0 : i32
    %c0_i32_1 = arith.constant 0 : i32
    return %c0_i32, %c0_i32_0 : i32, i32
  }
  func.func @transform_2(%arg0: i32) -> (i32, i32) {
    %c0_i32 = arith.constant 0 : i32
    %c0_i32_0 = arith.constant 0 : i32
    %c0_i32_1 = arith.constant 0 : i32
    return %c0_i32, %c0_i32_0 : i32, i32
  }
  func.func @transform_3(%arg0: i32) -> (i32, i32) {
    %c0_i32 = arith.constant 0 : i32
    %c0_i32_0 = arith.constant 0 : i32
    %c0_i32_1 = arith.constant 0 : i32
    return %c0_i32, %c0_i32_0 : i32, i32
  }
  func.func @transform_4(%arg0: i32) -> (i32, i32) {
    %c0_i32 = arith.constant 0 : i32
    %c0_i32_0 = arith.constant 0 : i32
    %c0_i32_1 = arith.constant 0 : i32
    return %c0_i32, %c0_i32_0 : i32, i32
  }
  func.func @transform_5(%arg0: i32) -> (i32, i32) {
    %c0_i32 = arith.constant 0 : i32
    %c0_i32_0 = arith.constant 0 : i32
    %c0_i32_1 = arith.constant 0 : i32
    return %c0_i32, %c0_i32_0 : i32, i32
  }
  func.func @transform_6(%arg0: i32) -> (i32, i32) {
    %c0_i32 = arith.constant 0 : i32
    %c0_i32_0 = arith.constant 0 : i32
    %c0_i32_1 = arith.constant 0 : i32
    return %c0_i32, %c0_i32_0 : i32, i32
  }
  func.func @transform_7(%arg0: i32) -> (i32, i32) {
    %c0_i32 = arith.constant 0 : i32
    %c0_i32_0 = arith.constant 0 : i32
    return %arg0, %c0_i32 : i32, i32
  }
}

</mosaic_0001>

<bundles_post_ra>
// kernel: tpu_custom_call.1
= control target key start
LH: loop header
LB: loop body
LE: loop exit
PB: predicated region body
PF: predicated region fallthrough
CT: control target
= control target key end

     0   :  { %12 = vsyncpa [#allocation3], 0  ;;  %s1308_s0 = inlined_call_operand.hbm [shape: bf16[32,64], index: 0, kind: input, shape index: {}]   ;;  %s1309_s1 = inlined_call_operand.vmem [shape: f32[1,64], index: 1, kind: input, shape index: {}]   ;;  %s1310_s2 = inlined_call_operand.vmem [shape: f32[1,64], index: 2, kind: input, shape index: {}]   ;;  %s1311_s3 = inlined_call_operand.hbm [shape: bf16[192,128], index: 3, kind: input, shape index: {}]   ;;  %s1312_s4 = inlined_call_operand.vmem [shape: f32[1,128], index: 4, kind: input, shape index: {}]   ;;  %s1313_s5 = inlined_call_operand.vmem [shape: f32[1,128], index: 5, kind: input, shape index: {}]   ;;  %s1314_s6 = inlined_call_operand.hbm [shape: bf16[448,128], index: 6, kind: input, shape index: {}]   ;;  %s1315_s7 = inlined_call_operand.hbm [shape: f32[32,128], index: 7, kind: output, shape index: {}]  }
   0x1   :  { %13 = vsyncpa [#allocation6], 0 }
   0x2   :  { %14 = vsyncpa [#allocation4], 0  ;;  %s1045_s24 = smov [#allocation5]   ;;  %s1046_s26 = smov [#allocation2]  }
   0x3   :  { %s36_s25 = sshll.u32 %s1045_s24, 4  ;;  %s20_s27 = sshll.u32 %s1046_s26, 4  ;;  %s37_s25 = int_to_ptr.vmem [resolvable:$true] %s36_s25  ;;  %s1095_s27 = int_to_ptr.vmem [resolvable:$true] %s20_s27 }
   0x4   :  { %s951_s30 = scalar_lea.hbm %s1311_s3, 1536 }
   0x5   :  { %p952_p0 = scmp.ne.s32.totalorder %s1311_s3, %s951_s30  ;;  %p955_p1 = scmp.lt.u32.totalorder %s951_s30, %s1311_s3 }
   0x7   :  { %p957_p2 = pnand %p955_p1, %p952_p0 }
   0x9   :  { %960 = shalt.err (!%p957_p2)
}
   0xa   :  { %s961_s12 = scalar_lea.vmem %s37_s25, 1536  ;;  %p966_p4 = scmp.lt.s32.totalorder %s37_s25, %s37_s25 }
   0xb   :  { %p962_p3 = scmp.ne.s32.totalorder %s37_s25, %s961_s12  ;;  %p967_p5 = scmp.lt.s32.totalorder %s961_s12, %s961_s12 }
   0xd   :  { %p968_p6 = por %p967_p5, %p966_p4 }
   0xf   :  { %p969_p7 = pnand %p968_p6, %p962_p3 }
  0x11   :  { %972 = shalt.err (!%p969_p7)
}
  0x12   :  { %s1047_s13 = smov 64   ;;  %s1048_s14 = smov 4  }
  0x13   :  { %42 = dma.hbm_to_vmem [thread:$0]  %s1311_s3, 1536, %s37_s25, [#allocation6], %s1047_s13, %s1047_s13, %s1048_s14  }
  0x14   :  { %s973_s19 = scalar_lea.hbm %s1308_s0, 256 }
  0x15   :  { %p974_p8 = scmp.ne.s32.totalorder %s1308_s0, %s973_s19  ;;  %p977_p9 = scmp.lt.u32.totalorder %s973_s19, %s1308_s0 }
  0x17   :  { %p979_p10 = pnand %p977_p9, %p974_p8 }
  0x19   :  { %982 = shalt.err (!%p979_p10)
}
  0x1a   :  { %s983_s24 = scalar_lea.vmem %s1095_s27, 256  ;;  %p988_p12 = scmp.lt.s32.totalorder %s1095_s27, %s1095_s27 }
  0x1b   :  { %p984_p11 = scmp.ne.s32.totalorder %s1095_s27, %s983_s24  ;;  %p989_p13 = scmp.lt.s32.totalorder %s983_s24, %s983_s24 }
  0x1d   :  { %p990_p0 = por %p989_p13, %p988_p12 }
  0x1f   :  { %p991_p1 = pnand %p990_p0, %p984_p11 }
  0x21   :  { %994 = shalt.err (!%p991_p1)
}
  0x22   :  { %26 = dma.hbm_to_vmem [thread:$0]  %s1308_s0, 256, %s1095_s27, [#allocation3], %s1047_s13, %s1047_s13, %s1048_s14  }
  0x23   :  { %s1049_s26 = smov [#allocation7]   ;;  %s995_s8 = scalar_lea.hbm %s1314_s6, 3584 }
  0x24   :  { %s52_s28 = sshll.u32 %s1049_s26, 4  ;;  %p996_p2 = scmp.ne.s32.totalorder %s1314_s6, %s995_s8  ;;  %s53_s28 = int_to_ptr.vmem [resolvable:$true] %s52_s28 }
  0x25   :  { %p999_p3 = scmp.lt.u32.totalorder %s995_s8, %s1314_s6 }
  0x27   :  { %p1001_p4 = pnand %p999_p3, %p996_p2 }
  0x29   :  { %1004 = shalt.err (!%p1001_p4)
}
  0x2a   :  { %s1005_s15 = scalar_lea.vmem %s53_s28, 3584  ;;  %p1010_p6 = scmp.lt.s32.totalorder %s53_s28, %s53_s28 }
  0x2b   :  { %p1006_p5 = scmp.ne.s32.totalorder %s53_s28, %s1005_s15  ;;  %p1011_p7 = scmp.lt.s32.totalorder %s1005_s15, %s1005_s15 }
  0x2d   :  { %p1012_p8 = por %p1011_p7, %p1010_p6 }
  0x2f   :  { %p1013_p9 = pnand %p1012_p8, %p1006_p5 }
  0x31   :  { %1016 = shalt.err (!%p1013_p9)
}
  0x32   :  { %58 = dma.hbm_to_vmem [thread:$0]  %s1314_s6, 3584, %s53_s28, [#allocation6], %s1047_s13, %s1047_s13, %s1048_s14  }
  0x33   :  { %1039 = dma.done.wait [#allocation3], 256  }
  0x34   :  { %1040 = vsyncadd [#allocation3], 4294967040 }
  0x35   :  { %1041 = dma.done.wait [#allocation6], 5120  }
  0x36   :  { %1042 = vsyncadd [#allocation6], 4294962176  ;;  %v1050_v0 = vmov 0   ;;  %v103_v1 = vlaneseq  ;;  %v855_v3 = vld [vmem:[#allocation2] sm:$0xff]   ;;  %v862_v8 = vld [vmem:[#allocation2 + $0x8] sm:$0xff]   ;;  %vm222_vm3 = vcmask 523264  }
  0x37   :  { %333 = vmatprep.subr.bf16.mxu0 %v1050_v0  ;;  %v790_v4 = vld [vmem:[%s1309_s1] ss:$0 sm:$0xff]  ;;  %v856_v6 = vunpack.c.l.bf16 %v855_v3  ;;  %v857_v7 = vunpack.c.h.bf16 %v855_v3  ;;  %v860_v9 = vunpack.c.l.bf16 %v862_v8  ;;  %v861_v10 = vunpack.c.h.bf16 %v862_v8  ;;  %v911_v11 = vld [vmem:[#allocation5] sm:$0xff]   ;;  %v912_v17 = vld [vmem:[#allocation5 + $0x8] sm:$0xff]  }
  0x38   :  { %v1148_v2 = vshrl.u32 %v103_v1, 7  ;;  %v791_v5 = vld [vmem:[%s1310_s2] ss:$0 sm:$0xff]  ;;  %334 = vmatpush1.bf16.msra.mxu0 %v911_v11  ;;  %v914_v36 = vld [vmem:[#allocation5 + $0x18] sm:$0xff]   ;;  %v915_v40 = vld [vmem:[#allocation5 + $0x20] sm:$0xff]   ;;  %vm1051_vm8 = vmmov 1  }
  0x39   :  { %v84_v12 = vmul.f32 %v856_v6, %v790_v4  ;;  %v85_v13 = vmul.f32 %v857_v7, %v790_v4  ;;  %v86_v15 = vmul.f32 %v860_v9, %v790_v4  ;;  %v87_v16 = vmul.f32 %v861_v10, %v790_v4  ;;  %335 = vmatprep.subr.bf16.mxu0 %v1050_v0  ;;  %v913_v25 = vld [vmem:[#allocation5 + $0x10] sm:$0xff]   ;;  %v923_v43 = vld [vmem:[#allocation7 + $0x40] sm:$0xff]   ;;  %v925_v49 = vld [vmem:[#allocation7 + $0x48] sm:$0xff]  }
  0x3a   :  { %v105_v14 = vadd.s32 8, %v1148_v2  ;;  %v107_v22 = vadd.s32 24, %v1148_v2  ;;  %vm189_vm0 = vcmp.lt.s32.totalorder %v1148_v2, 7  ;;  %863 = vmatprep.subr.bf16.mxu1 %v923_v43  ;;  %v924_v47 = vld [vmem:[#allocation7] sm:$0xff]   ;;  %v926_v50 = vld [vmem:[#allocation7 + $0x8] sm:$0xff]   ;;  %v927_v53 = vld [vmem:[#allocation7 + $0x50] sm:$0xff]  }
  0x3b   :  { %v95_v18 = vadd.f32 %v791_v5, %v84_v12  ;;  %v96_v19 = vadd.f32 %v791_v5, %v85_v13  ;;  %v97_v20 = vadd.f32 %v791_v5, %v86_v15  ;;  %v98_v21 = vadd.f32 %v791_v5, %v87_v16  ;;  %v916_v51 = vld [vmem:[#allocation5 + $0x28] sm:$0xff]   ;;  %864 = vmatpush3.bf16.msra.mxu1 %v924_v47  ;;  %v928_v54 = vld [vmem:[#allocation7 + $0x10] sm:$0xff]   ;;  %v918_v56 = vld [vmem:[#allocation5 + $0x38] sm:$0xff]  }
  0x3c   :  { %v119_v26 = vand.u32 15, %v105_v14  ;;  %336 = vmatpush1.bf16.msra.mxu0 %v912_v17  ;;  %v133_v32 = vand.u32 15, %v107_v22  ;;  %865 = vmatprep.subr.bf16.mxu1 %v925_v49  ;;  %v917_v55 = vld [vmem:[#allocation5 + $0x30] sm:$0xff]   ;;  %v919_v57 = vld [vmem:[#allocation5 + $0x40] sm:$0xff]   ;;  %v920_v58 = vld [vmem:[#allocation5 + $0x48] sm:$0xff]   ;;  %v112_v61 = vand.u32 15, %v1148_v2 }
  0x3d   :  { %v1159_v23 = vmax.f32 %v95_v18, 0.0  ;;  %v1161_v24 = vmax.f32 %v96_v19, 0.0  ;;  %v1163_v27 = vmax.f32 %v97_v20, 0.0  ;;  %v1165_v28 = vmax.f32 %v98_v21, 0.0  ;;  %337 = vmatprep.subr.bf16.mxu0 %v1050_v0  ;;  %v921_v59 = vld [vmem:[#allocation5 + $0x50] sm:$0xff]   ;;  %v922_v60 = vld [vmem:[#allocation5 + $0x58] sm:$0xff]  }
  0x3e   :  { %vm1176_vm1 = vcmp.eq.s32.totalorder %v119_v26, 15  ;;  %vm1189_vm2 = vcmp.eq.s32.totalorder %v133_v32, 15  ;;  %v106_v1 = vadd.s32 16, %v1148_v2  ;;  %vm164_vm4 = vcmp.lt.s32.totalorder %v1148_v2, 1  ;;  %v931_v32 = vld [vmem:[#allocation7 + $0x60] sm:$0xff]   ;;  %v944_v13 = vld [vmem:[#allocation7 + $0xa8] sm:$0xff]  }
  0x3f   :  { %v901_v29 = vpack.i.bf16 %v1161_v24, %v1159_v23  ;;  %v185_v30 = vrot.slane %v1159_v23, 1  ;;  %v186_v31 = vrot.slane %v1161_v24, 1  ;;  %v906_v33 = vpack.i.bf16 %v1165_v28, %v1163_v27  ;;  %866 = vmatpush3.bf16.msra.mxu1 %v926_v50  ;;  %vm845_vm12 = vmneg %vm1176_vm1 }
  0x40   :  { %v187_v35 = vrot.slane %v1163_v27, 1  ;;  %338 = vmatpush1.bf16.msra.mxu0 %v913_v25  ;;  %v188_v39 = vrot.slane %v1165_v28, 1  ;;  %867 = vmatprep.subr.bf16.mxu1 %v927_v53  ;;  %v160_v62 = vrot.slane %v1159_v23, 7  ;;  %v163_v63 = vrot.slane %v1165_v28, 7  ;;  %vm846_vm13 = vmpackc.low %vm845_vm12, %vm1051_vm8 }
  0x41   :  { %902 = vrot.lane.b32.xlu0 %v901_v29, %s1047_s13  ;;  %v192_v37 = vsel %vm189_vm0, %v185_v30, %v186_v31  ;;  %339 = vmatprep.subr.bf16.mxu0 %v1050_v0  ;;  %v161_v3 = vrot.slane %v1161_v24, 7  ;;  %vm1215_vm5 = vcmp.eq.s32.totalorder %v112_v61, 0  ;;  %v126_v6 = vand.u32 15, %v106_v1  ;;  %vm850_vm14 = vmneg %vm1189_vm2 }
  0x42   :  { %v191_v38 = vsel %vm189_vm0, %v186_v31, %v187_v35  ;;  %v190_v45 = vsel %vm189_vm0, %v187_v35, %v188_v39  ;;  %v193_v46 = vsel %vm189_vm0, %v188_v39, %v185_v30  ;;  %v168_v5 = vsel %vm164_vm4, %v163_v63, %v160_v62  ;;  %v929_v30 = vld [vmem:[#allocation7 + $0x58] sm:$0xff]   ;;  %v933_v35 = vld [vmem:[#allocation7 + $0x68] sm:$0xff]   ;;  %vm836_vm7 = vmneg %vm1215_vm5 }
  0x43   :  { %v203_v41 = vsel %vm1176_vm1, 0.0, %v191_v38  ;;  %v205_v48 = vsel %vm1189_vm2, 0.0, %v193_v46  ;;  %868 = vmatpush3.bf16.msra.mxu1 %v928_v54  ;;  %v162_v7 = vrot.slane %v1163_v27, 7  ;;  %v167_v9 = vsel %vm164_vm4, %v160_v62, %v161_v3  ;;  %v930_v31 = vld [vmem:[#allocation7 + $0x18] sm:$0xff]   ;;  %v936_v38 = vld [vmem:[#allocation7 + $0x30] sm:$0xff]   ;;  %vm837_vm9 = vmpackc.low %vm1051_vm8, %vm836_vm7 }
  0x44   :  { %v228_v44 = vpack.c.bf16 %v203_v41, %v192_v37  ;;  %340 = vmatpush1.bf16.msra.mxu0 %v914_v36  ;;  %v230_v52 = vpack.c.bf16 %v205_v48, %v190_v45  ;;  %v177_v10 = vsel %vm1215_vm5, 0.0, %v168_v5  ;;  %vm1226_vm6 = vcmp.eq.s32.totalorder %v126_v6, 0  ;;  %869 = vmatprep.subr.bf16.mxu1 %v929_v30  ;;  %v934_v36 = vld [vmem:[#allocation7 + $0x28] sm:$0xff]   ;;  %v935_v37 = vld [vmem:[#allocation7 + $0x70] sm:$0xff]   ;;  %v937_v39 = vld [vmem:[#allocation7 + $0x78] sm:$0xff]  }
  0x45   :  { %907 = vrot.lane.b32.xlu0 %v906_v33, %s1047_s13  ;;  %341 = vmatprep.subr.bf16.mxu0 %v1050_v0  ;;  %v166_v14 = vsel %vm164_vm4, %v161_v3, %v162_v7  ;;  %v165_v19 = vsel %vm164_vm4, %v162_v7, %v163_v63  ;;  %v932_v33 = vld [vmem:[#allocation7 + $0x20] sm:$0xff]   ;;  %v806_v41 = vld [vmem:[%s1312_s4] ss:$0 sm:$0xff]  ;;  %v940_v30 = vld [vmem:[#allocation7 + $0x88] sm:$0xff]   ;;  %v435_v2 = vpack.c.bf16 %v1161_v24, %v1159_v23  ;;  %s1052_s4 = smov [#allocation8]  }
  0x46   :  { %804 = vmatprep.mubr.msk.bf16.mxu0 %vm222_vm3, %v228_v44  ;;  %v179_v20 = vsel %vm1226_vm6, 0.0, %v166_v14  ;;  %v807_v44 = vld [vmem:[%s1313_s5] ss:$0 sm:$0xff]  ;;  %vm840_vm10 = vmneg %vm1226_vm6  ;;  %v946_v23 = vld [vmem:[#allocation7 + $0xb8] sm:$0xff]   ;;  %s777_s5 = sshll.u32 %s1052_s4, 4  ;;  %s778_s5 = int_to_ptr.vmem [resolvable:$true] %s777_s5 }
  0x47   :  { %870 = vmatpush3.bf16.msra.mxu1 %v930_v31  ;;  %vm841_vm11 = vmpackc.low %vm1051_vm8, %vm840_vm10  ;;  %v941_v31 = vld [vmem:[#allocation7 + $0x90] sm:$0xff]   ;;  %v947_v24 = vld [vmem:[#allocation7 + $0xc0] sm:$0xff]   ;;  %s1017_s14 = scalar_lea.vmem %s778_s5, 512  ;;  %p1022_p11 = scmp.lt.s32.totalorder %s778_s5, %s778_s5 }
  0x48   :  { %342 = vmatpush1.bf16.msra.mxu0 %v915_v40  ;;  %871 = vmatprep.subr.bf16.mxu1 %v931_v32  ;;  %v938_v40 = vld [vmem:[#allocation7 + $0x38] sm:$0xff]   ;;  %vm851_vm15 = vmpackc.low %vm850_vm14, %vm1051_vm8  ;;  %p1018_p10 = scmp.ne.s32.totalorder %s778_s5, %s1017_s14  ;;  %p1023_p12 = scmp.lt.s32.totalorder %s1017_s14, %s1017_s14 }
  0x49   :  { %343 = vmatprep.subr.bf16.mxu0 %v1050_v0  ;;  %v942_v32 = vld [vmem:[#allocation7 + $0x98] sm:$0xff]  }
  0x4a   :  { %p1024_p13 = por %p1023_p12, %p1022_p11 }
  0x4b   :  { %872 = vmatpush3.bf16.msra.mxu1 %v932_v33  ;;  %v943_v33 = vld [vmem:[#allocation7 + $0xa0] sm:$0xff]  }
  0x4c   :  { %344 = vmatpush1.bf16.msra.mxu0 %v916_v51  ;;  %873 = vmatprep.subr.bf16.mxu1 %v933_v35  ;;  %v945_v35 = vld [vmem:[#allocation7 + $0xb0] sm:$0xff]   ;;  %p1025_p0 = pnand %p1024_p13, %p1018_p10 }
  0x4d   :  { %345 = vmatprep.subr.bf16.mxu0 %v1050_v0 }
  0x4f   :  { %874 = vmatpush3.bf16.msra.mxu1 %v934_v36  ;;  %v948_v36 = vld [vmem:[#allocation7 + $0xc8] sm:$0xff]  }
  0x50   :  { %346 = vmatpush1.bf16.msra.mxu0 %v917_v55  ;;  %875 = vmatprep.subr.bf16.mxu1 %v935_v37  ;;  %v949_v37 = vld [vmem:[#allocation7 + $0xd0] sm:$0xff]  }
  0x51   :  { %347 = vmatprep.subr.bf16.mxu0 %v1050_v0 }
  0x53   :  { %876 = vmatpush3.bf16.msra.mxu1 %v936_v38  ;;  %v950_v38 = vld [vmem:[#allocation7 + $0xd8] sm:$0xff]  }
  0x54   :  { %348 = vmatpush1.bf16.msra.mxu0 %v918_v56  ;;  %877 = vmatprep.subr.bf16.mxu1 %v937_v39  ;;  %v439_v39 = vpack.c.bf16 %v1165_v28, %v1163_v27 }
  0x55   :  { %349 = vmatprep.subr.bf16.mxu0 %v1050_v0 }
  0x57   :  { %878 = vmatpush3.bf16.msra.mxu1 %v938_v40 }
  0x58   :  { %350 = vmatpush1.bf16.msra.mxu0 %v919_v57  ;;  %719 = vmatprep.subr.bf16.mxu1 %v1050_v0 }
  0x59   :  { %351 = vmatprep.subr.bf16.mxu0 %v1050_v0 }
  0x5c   :  { %352 = vmatpush1.bf16.msra.mxu0 %v920_v58 }
  0x5d   :  { %353 = vmatprep.subr.bf16.mxu0 %v1050_v0 }
  0x60   :  { %354 = vmatpush1.bf16.msra.mxu0 %v921_v59 }
  0x61   :  { %355 = vmatprep.subr.bf16.mxu0 %v1050_v0 }
  0x64   :  { %356 = vmatpush1.bf16.msra.mxu0 %v922_v60 }
  0xb3   :  { %v903_v8 = vpop.permute.xlu0 %902 }
  0xb4   :  { %v905_v11 = vunpack.i.h.bf16 %v903_v8  ;;  %v904_v12 = vunpack.i.l.bf16 %v903_v8 }
  0xb6   :  { %v223_v15 = vsel %vm222_vm3, %v177_v10, %v904_v12  ;;  %v224_v16 = vsel %vm222_vm3, %v167_v9, %v905_v11 }
  0xb7   :  { %v227_v17 = vpack.c.bf16 %v224_v16, %v223_v15  ;;  %v908_v18 = vpop.permute.xlu0 %907 }
  0xb8   :  { %v910_v21 = vunpack.i.h.bf16 %v908_v18  ;;  %v909_v22 = vunpack.i.l.bf16 %v908_v18 }
  0xb9   :  { %366 = vmatmul.mubr.bf16.vlgmr.msra.gmra.mrb[0].mxu0 %v227_v17 }
  0xba   :  { %805 = vmatprep.mubr.msk.bf16.mxu0 %vm222_vm3, %v230_v52  ;;  %v225_v25 = vsel %vm222_vm3, %v179_v20, %v909_v22  ;;  %v226_v26 = vsel %vm222_vm3, %v165_v19, %v910_v21  ;;  %v939_v20 = vld [vmem:[#allocation7 + $0x80] sm:$0xff]  }
  0xbb   :  { %v229_v29 = vpack.c.bf16 %v226_v26, %v225_v25 }
  0xc1   :  { %374 = vmatmul.mubr.bf16.gmra.mrb[4].mxu0 %v229_v29 }
 0x18c   :  { %v367_v43 = vpop.f32.mrb[0].mxu0 }
 0x18d   :  { %v389_v45 = vmul.f32 %v806_v41, %v367_v43  ;;  %v369_v46 = vpop.f32.mrb[1].mxu0 }
 0x18e   :  { %v370_v47 = vpop.f32.mrb[2].mxu0 }
 0x18f   :  { %v400_v48 = vadd.f32 %v807_v44, %v389_v45  ;;  %v390_v49 = vmul.f32 %v806_v41, %v370_v47  ;;  %v372_v50 = vpop.f32.mrb[3].mxu0 }
 0x191   :  { %v404_v51 = vmax.f32 %v400_v48, 0.0  ;;  %v401_v52 = vadd.f32 %v807_v44, %v390_v49 }
 0x193   :  { %v405_v53 = vmax.f32 %v401_v52, 0.0  ;;  %v408_v54 = vrot.slane %v404_v51, 7  ;;  %v420_v55 = vrot.slane %v404_v51, 1 }
 0x194   :  { %v375_v56 = vpop.f32.mrb[4].mxu0 }
 0x195   :  { %v409_v57 = vrot.slane %v405_v53, 7  ;;  %v421_v58 = vrot.slane %v405_v53, 1  ;;  %v391_v59 = vmul.f32 %v806_v41, %v375_v56  ;;  %v377_v60 = vpop.f32.mrb[5].mxu0  ;;  %v433_v61 = vpack.c.bf16 %v405_v53, %v404_v51 }
 0x196   :  { %v378_v62 = vpop.f32.mrb[6].mxu0 }
 0x197   :  { %v1250_v63 = vsel %vm189_vm0, %v420_v55, %v421_v58  ;;  %v402_v1 = vadd.f32 %v807_v44, %v391_v59  ;;  %v392_v3 = vmul.f32 %v806_v41, %v378_v62  ;;  %v380_v5 = vpop.f32.mrb[7].mxu0  ;;  %702 = vmatprep.mubr.bf16.mxu1 %v433_v61  ;;  %v414_v6 = vsel %vm164_vm4, %v408_v54, %v409_v57 }
 0x199   :  { %v406_v7 = vmax.f32 %v402_v1, 0.0  ;;  %v403_v8 = vadd.f32 %v807_v44, %v392_v3 }
 0x19b   :  { %v410_v9 = vrot.slane %v406_v7, 7  ;;  %v422_v10 = vrot.slane %v406_v7, 1  ;;  %v407_v11 = vmax.f32 %v403_v8, 0.0 }
 0x19d   :  { %v425_v12 = vsel %vm189_vm0, %v421_v58, %v422_v10  ;;  %v411_v14 = vrot.slane %v407_v11, 7  ;;  %v423_v15 = vrot.slane %v407_v11, 1  ;;  %v437_v16 = vpack.c.bf16 %v407_v11, %v406_v7 }
 0x19e   :  { %v847_v17 = vpack.c.bf16 %v425_v12, %v1250_v63  ;;  %v413_v18 = vsel %vm164_vm4, %v409_v57, %v410_v9 }
 0x19f   :  { %v415_v19 = vsel %vm164_vm4, %v411_v14, %v408_v54  ;;  %v412_v4 = vsel %vm164_vm4, %v410_v9, %v411_v14  ;;  %v424_v21 = vsel %vm189_vm0, %v422_v10, %v423_v15  ;;  %v427_v22 = vsel %vm189_vm0, %v423_v15, %v420_v55 }
 0x1a0   :  { %v838_v25 = vpack.c.bf16 %v414_v6, %v415_v19  ;;  %v842_v26 = vpack.c.bf16 %v412_v4, %v413_v18  ;;  %v852_v29 = vpack.c.bf16 %v427_v22, %v424_v21 }
 0x1a2   :  { %839 = vmatmul.mubr.msk.bf16.vlgmr.msra.gmra.mrb[0].mxu1 %vm837_vm9, %v838_v25 }
 0x1a3   :  { %720 = vmatpush1.bf16.msra.mxu1 %v939_v20  ;;  %710 = vmatprep.mubr.bf16.mxu1 %v437_v16 }
 0x1a4   :  { %721 = vmatprep.subr.bf16.mxu1 %v1050_v0 }
 0x1a7   :  { %722 = vmatpush1.bf16.msra.mxu1 %v940_v30 }
 0x1a8   :  { %723 = vmatprep.subr.bf16.mxu1 %v1050_v0 }
 0x1aa   :  { %843 = vmatmul.mubr.msk.bf16.gmra.mrb[4].mxu1 %vm841_vm11, %v842_v26 }
 0x1ab   :  { %724 = vmatpush1.bf16.msra.mxu1 %v941_v31  ;;  %844 = vmatprep.mubr.msk.bf16.mxu1 %vm222_vm3, %v435_v2 }
 0x1ac   :  { %725 = vmatprep.subr.bf16.mxu1 %v1050_v0 }
 0x1af   :  { %726 = vmatpush1.bf16.msra.mxu1 %v942_v32 }
 0x1b0   :  { %727 = vmatprep.subr.bf16.mxu1 %v1050_v0 }
 0x1b3   :  { %728 = vmatpush1.bf16.msra.mxu1 %v943_v33 }
 0x1b4   :  { %729 = vmatprep.subr.bf16.mxu1 %v1050_v0 }
 0x1b7   :  { %730 = vmatpush1.bf16.msra.mxu1 %v944_v13 }
 0x1b8   :  { %731 = vmatprep.subr.bf16.mxu1 %v1050_v0 }
 0x1bb   :  { %732 = vmatpush1.bf16.msra.mxu1 %v945_v35 }
 0x1bc   :  { %733 = vmatprep.subr.bf16.mxu1 %v1050_v0 }
 0x1bf   :  { %734 = vmatpush1.bf16.msra.mxu1 %v946_v23 }
 0x1c0   :  { %735 = vmatprep.subr.bf16.mxu1 %v1050_v0 }
 0x1c3   :  { %736 = vmatpush1.bf16.msra.mxu1 %v947_v24 }
 0x1c4   :  { %737 = vmatprep.subr.bf16.mxu1 %v1050_v0 }
 0x1c7   :  { %738 = vmatpush1.bf16.msra.mxu1 %v948_v36 }
 0x1c8   :  { %739 = vmatprep.subr.bf16.mxu1 %v1050_v0 }
 0x1cb   :  { %740 = vmatpush1.bf16.msra.mxu1 %v949_v37 }
 0x1cc   :  { %741 = vmatprep.subr.bf16.mxu1 %v1050_v0 }
 0x1cf   :  { %742 = vmatpush1.bf16.msra.mxu1 %v950_v38 }
 0x1d2   :  { %848 = vmatmul.mubr.msk.bf16.vlgmr.msra.gmra.mrb[8].mxu1 %vm846_vm13, %v847_v17 }
 0x1d3   :  { %849 = vmatprep.mubr.msk.bf16.mxu1 %vm222_vm3, %v439_v39 }
 0x1da   :  { %853 = vmatmul.mubr.msk.bf16.gmra.mrb[12].mxu1 %vm851_vm15, %v852_v29 }
 0x275   :  { %v879_v40 = vpop.f32.mrb[0].mxu1 }
 0x276   :  { %v880_v34 = vpop.f32.mrb[1].mxu1 }
 0x277   :  { %v881_v41 = vadd.f32 %v880_v34, %v879_v40  ;;  %v882_v43 = vpop.f32.mrb[2].mxu1 }
 0x278   :  { %v883_v0 = vpop.f32.mrb[3].mxu1 }
 0x279   :  { %v884_v44 = vadd.f32 %v883_v0, %v882_v43 }
 0x27d   :  { %v885_v45 = vpop.f32.mrb[4].mxu1 }
 0x27e   :  { %v886_v46 = vpop.f32.mrb[5].mxu1 }
 0x27f   :  { %v887_v47 = vadd.f32 %v886_v46, %v885_v45  ;;  %v888_v48 = vpop.f32.mrb[6].mxu1 }
 0x280   :  { %v889_v27 = vpop.f32.mrb[7].mxu1 }
 0x281   :  { %v890_v28 = vadd.f32 %v889_v27, %v888_v48 }
 0x2a5   :  { %v753_v49 = vpop.f32.mrb[8].mxu1 }
 0x2a6   :  { %v754_v50 = vadd.f32 %v881_v41, %v753_v49  ;;  %v755_v51 = vpop.f32.mrb[9].mxu1 }
 0x2a7   :  { %v756_v42 = vpop.f32.mrb[10].mxu1 }
 0x2a8   :  { %768 = vst [vmem:[#allocation8] sm:$0xff] %v754_v50  ;;  %v757_v52 = vadd.f32 %v884_v44, %v756_v42  ;;  %v758_v53 = vpop.f32.mrb[11].mxu1 }
 0x2aa   :  { %769 = vst [vmem:[#allocation8 + $0x8] sm:$0xff] %v757_v52 }
 0x2ad   :  { %v761_v54 = vpop.f32.mrb[12].mxu1 }
 0x2ae   :  { %v762_v55 = vadd.f32 %v887_v47, %v761_v54  ;;  %v763_v56 = vpop.f32.mrb[13].mxu1 }
 0x2af   :  { %v764_v57 = vpop.f32.mrb[14].mxu1 }
 0x2b0   :  { %770 = vst [vmem:[#allocation8 + $0x10] sm:$0xff] %v762_v55  ;;  %v765_v58 = vadd.f32 %v890_v28, %v764_v57  ;;  %v766_v59 = vpop.f32.mrb[15].mxu1 }
 0x2b2   :  { %771 = vst [vmem:[#allocation8 + $0x18] sm:$0xff] %v765_v58 }
 0x2b3   :  { %1028 = shalt.err (!%p1025_p0)
}
 0x2b4   :  { %s1029_s22 = scalar_lea.hbm %s1315_s7, 512 }
 0x2b5   :  { %p1030_p1 = scmp.ne.s32.totalorder %s1315_s7, %s1029_s22  ;;  %p1033_p2 = scmp.lt.u32.totalorder %s1029_s22, %s1315_s7 }
 0x2b7   :  { %p1035_p3 = pnand %p1033_p2, %p1030_p1 }
 0x2b9   :  { %1038 = shalt.err (!%p1035_p3)
}
 0x2ba   :  { %s1053_s26 = smov 128   ;;  %s1054_s28 = smov 8  }
 0x2bb   :  { %783 = dma.vmem_to_hbm [thread:$0]  %s778_s5, 512, %s1315_s7, [#allocation4], %s1053_s26, %s1053_s26, %s1054_s28  }
 0x2bc   :  { %1043 = dma.done.wait [#allocation4], 512  }
 0x2bd   :  { %1044 = vsyncadd [#allocation4], 4294966784 }
 0x2be   :  { %787 = vsyncpa [#allocation3], 1 }
 0x2bf   :  { %788 = vsyncpa [#allocation6], 1 }
 0x2c0   :  { %789 = vsyncpa [#allocation4], 1 }

</bundles_post_ra>
